<compile_context>
chip_gen: v5e
topology: v5e:2x2
jax: 0.10.0
libtpu: 0.0.40
codegen_flags: <defaults>
</compile_context>

<pallas_src>
import jax
import jax.numpy as jnp
from jax import lax
from jax.experimental import pallas as pl
from jax.experimental.pallas import tpu as pltpu

_LANE = 128


def linear_add_kernel(x_ref, w_ref, other_ref, o_ref):
    # x: (M, K), w: (K, Np) lane-dense MXU-native layout,
    # other: (M, N) or (1, N), out: (M, N).  All resident in VMEM.
    acc = lax.dot_general(
        x_ref[...],
        w_ref[...],
        dimension_numbers=(((1,), (0,)), ((), ())),  # x @ w  (K contracted)
        preferred_element_type=jnp.float32,
    )
    n = o_ref.shape[-1]
    # Drop the zero-padded weight columns; broadcast-add `other` on the VPU
    # (handles both (M, N) and (1, N) `other`).
    o_ref[...] = (acc[:, :n] + other_ref[...]).astype(o_ref.dtype)


def prepare_weight(w):
    """One-time weight prep (call at parameter-load time, NOT per forward).

    PyTorch nn.Linear weight (out_features N, in_features K) -> (K, Np) with
    the N (lane) dim zero-padded to a multiple of 128 so the MXU weight push
    is a straight lane-dense load.
    """
    N, K = w.shape
    Np = ((N + _LANE - 1) // _LANE) * _LANE
    w_kn = w.T
    if Np != N:
        w_kn = jnp.pad(w_kn, ((0, 0), (0, Np - N)))
    return w_kn, N


def linear_add(x, w_kn, other, n_out):
    """Computes x @ W.T + other, with W pre-packed by prepare_weight()."""
    M, K = x.shape
    K2, Np = w_kn.shape
    assert K == K2

    # Bias-like `other` stays small: (N,) / (1, N) -> (1, N) VMEM input,
    # broadcast inside the kernel.  A full (M, N) `other` passes through as-is.
    if other.ndim == 1:
        other = other[None, :]
    assert other.shape in ((M, n_out), (1, n_out))
    other = other.astype(x.dtype)

    bytes_f32 = 4
    cost = pl.CostEstimate(
        flops=2 * M * K * n_out,
        transcendentals=0,
        bytes_accessed=bytes_f32
        * (M * K + K * Np + other.shape[0] * n_out + M * n_out),
    )

    return pl.pallas_call(
        linear_add_kernel,
        out_shape=jax.ShapeDtypeStruct((M, n_out), x.dtype),
        # Whole arrays resident in VMEM; no grid -> nothing to pipeline.
        in_specs=[
            pl.BlockSpec(memory_space=pltpu.MemorySpace.VMEM),
            pl.BlockSpec(memory_space=pltpu.MemorySpace.VMEM),
            pl.BlockSpec(memory_space=pltpu.MemorySpace.VMEM),
        ],
        out_specs=pl.BlockSpec(memory_space=pltpu.MemorySpace.VMEM),
        cost_estimate=cost,
    )(x, w_kn, other)


if __name__ == "__main__":
    key = jax.random.PRNGKey(0)
    kx, kw, ko = jax.random.split(key, 3)

    M, K, N = 120, 20, 100  # torch.randn(120, 20), Linear(20, 100, bias=False)

    x = jax.random.normal(kx, (M, K), dtype=jnp.float32)
    # nn.Linear weight shape (100, 20); forward is x @ W.T.
    bound = 1.0 / (K ** 0.5)
    w = jax.random.uniform(kw, (N, K), minval=-bound, maxval=bound, dtype=jnp.float32)
    other = jax.random.normal(ko, (M, N), dtype=jnp.float32)

    # One-time weight packing (parameter-load time, outside the hot path).
    w_kn, n_out = prepare_weight(w)

    fn = jax.jit(linear_add, static_argnums=(3,))

    # Case 1: full (M, N) `other` (matches the spec's forward).
    out = jax.block_until_ready(fn(x, w_kn, other, n_out))
    ref = x @ w.T + other
    assert out.shape == (M, N)
    assert jnp.allclose(out, ref, atol=1e-4, rtol=1e-4)

    # Case 2: bias-like (N,) `other` — broadcast inside the kernel, no HBM blow-up.
    bias = jax.random.normal(ko, (N,), dtype=jnp.float32)
    out_b = jax.block_until_ready(fn(x, w_kn, bias, n_out))
    ref_b = x @ w.T + bias[None, :]
    assert jnp.allclose(out_b, ref_b, atol=1e-4, rtol=1e-4)

    print("KERNEL_OK")
</pallas_src>

<mosaic_0001>
module attributes {stable_mosaic.version = 11 : i64} {
  func.func @linear_add_kernel(%arg0: memref<120x20xf32, #tpu.memory_space<vmem>>, %arg1: memref<20x128xf32, #tpu.memory_space<vmem>>, %arg2: memref<120x100xf32, #tpu.memory_space<vmem>>, %arg3: memref<120x100xf32, #tpu.memory_space<vmem>>) attributes {dimension_semantics = [], scalar_prefetch = 0 : i64, scratch_operands = 0 : i64, tpu.core_type = #tpu.core_type<tc>} {
    %c0 = arith.constant 0 : index
    %c0_0 = arith.constant 0 : index
    %0 = vector.load %arg0[%c0, %c0_0] : memref<120x20xf32, #tpu.memory_space<vmem>>, vector<120x20xf32>
    %c0_1 = arith.constant 0 : index
    %c0_2 = arith.constant 0 : index
    %1 = vector.load %arg1[%c0_1, %c0_2] : memref<20x128xf32, #tpu.memory_space<vmem>>, vector<20x128xf32>
    %cst = arith.constant dense<0.000000e+00> : vector<120x128xf32>
    %2 = tpu.matmul %0, %1, %cst {dimension_numbers = #tpu.dot_dimension_numbers<[1], [0], [0], [1], [0, 0, 1, 1], [], []>} : vector<120x20xf32>, vector<20x128xf32>, vector<120x128xf32> -> vector<120x128xf32>
    %3 = vector.extract_strided_slice %2 {offsets = [0, 0], sizes = [120, 100], strides = [1, 1]} : vector<120x128xf32> to vector<120x100xf32>
    %c0_3 = arith.constant 0 : index
    %c0_4 = arith.constant 0 : index
    %4 = vector.load %arg2[%c0_3, %c0_4] : memref<120x100xf32, #tpu.memory_space<vmem>>, vector<120x100xf32>
    %5 = arith.addf %3, %4 : vector<120x100xf32>
    %c0_5 = arith.constant 0 : index
    %c0_6 = arith.constant 0 : index
    %6 = vector.load %arg3[%c0_5, %c0_6] : memref<120x100xf32, #tpu.memory_space<vmem>>, vector<120x100xf32>
    tpu.vector_store %arg3[%c0_5, %c0_6], %5 {strides = array<i32>} : memref<120x100xf32, #tpu.memory_space<vmem>>, vector<120x100xf32>,
    return
  }
}

</mosaic_0001>

<bundles_post_ra>
// kernel: linear_add.1
= control target key start
LH: loop header
LB: loop body
LE: loop exit
PB: predicated region body
PF: predicated region fallthrough
CT: control target
= control target key end

     0   :  { %vm78_vm0 = vcmask 1043456   ;;  %vm32_vm1 = vcmask 162816   ;;  %vm174_vm2 = vcmask 818176   ;;  %s413_s1 = inlined_call_operand.vmem [shape: f32[20,128], index: 1, kind: input, shape index: {}]   ;;  %s414_s0 = inlined_call_operand.vmem [shape: f32[120,20], index: 0, kind: input, shape index: {}]   ;;  %s415_s2 = inlined_call_operand.vmem [shape: f32[120,100], index: 2, kind: input, shape index: {}]   ;;  %s416_s3 = inlined_call_operand.vmem [shape: f32[120,100], index: 3, kind: output, shape index: {}]  }
   0x1   :  { %v31_v0 = vld [vmem:[%s413_s1 + $0x10] sm:$0xf]  ;;  %v30_v1 = vld [vmem:[%s413_s1 + $0x8] sm:$0xff]  ;;  %v29_v2 = vld [vmem:[%s413_s1] sm:$0xff] }
   0x2   :  { %211 = vmatpush.msk.msra.mxu2 %vm78_vm0, %v31_v0  ;;  %194 = vmatpush.msk.msra.mxu0 %vm78_vm0, %v31_v0  ;;  %v22_v3 = vld [vmem:[%s414_s0 + $0x40] sm:$0xff]  ;;  %v23_v7 = vld [vmem:[%s414_s0 + $0x48] sm:$0xff]  ;;  %v24_v11 = vld [vmem:[%s414_s0 + $0x50] sm:$0xff] }
   0x3   :  { %210 = vmatpush.msk.msra.mxu1 %vm78_vm0, %v31_v0  ;;  %212 = vmatpush.msk.msra.mxu3 %vm78_vm0, %v31_v0  ;;  %v14_v4 = vld [vmem:[%s414_s0] sm:$0xff]  ;;  %v15_v8 = vld [vmem:[%s414_s0 + $0x8] sm:$0xff]  ;;  %v16_v12 = vld [vmem:[%s414_s0 + $0x10] sm:$0xff] }
   0x4   :  { %214 = vmatpush.msra.mxu2 %v30_v1  ;;  %96 = vmatpush.msra.mxu0 %v30_v1  ;;  %v18_v5 = vld [vmem:[%s414_s0 + $0x20] sm:$0xff]  ;;  %v19_v9 = vld [vmem:[%s414_s0 + $0x28] sm:$0xff]  ;;  %v20_v13 = vld [vmem:[%s414_s0 + $0x30] sm:$0xff] }
   0x5   :  { %213 = vmatpush.msra.mxu1 %v30_v1  ;;  %215 = vmatpush.msra.mxu3 %v30_v1  ;;  %v26_v6 = vld [vmem:[%s414_s0 + $0x60] sm:$0xff]  ;;  %v27_v10 = vld [vmem:[%s414_s0 + $0x68] sm:$0xff]  ;;  %v28_v14 = vld [vmem:[%s414_s0 + $0x70] sm:$0xff] }
   0x6   :  { %217 = vmatpush.msra.mxu2 %v29_v2  ;;  %97 = vmatpush.msra.mxu0 %v29_v2  ;;  %v25_v15 = vld [vmem:[%s414_s0 + $0x58] sm:$0xff]  ;;  %v144_v18 = vld [vmem:[%s415_s2] sm:$0xff]  ;;  %v145_v27 = vld [vmem:[%s415_s2 + $0x8] sm:$0xff] }
   0x7   :  { %203 = vmatmul.msk.f32.vlgmr.msra.gmra.mxu2 %vm32_vm1, %v22_v3  ;;  %216 = vmatpush.msra.mxu1 %v29_v2  ;;  %v17_v16 = vld [vmem:[%s414_s0 + $0x18] sm:$0xff]  ;;  %v148_v19 = vld [vmem:[%s415_s2 + $0x20] sm:$0xff]  ;;  %v149_v28 = vld [vmem:[%s415_s2 + $0x28] sm:$0xff] }
   0x8   :  { %195 = vmatmul.msk.f32.vlgmr.msra.gmra.mxu0 %vm32_vm1, %v14_v4  ;;  %199 = vmatmul.msk.f32.vlgmr.msra.gmra.mxu1 %vm32_vm1, %v18_v5  ;;  %v21_v17 = vld [vmem:[%s414_s0 + $0x38] sm:$0xff]  ;;  %v152_v24 = vld [vmem:[%s415_s2 + $0x40] sm:$0xff]  ;;  %v153_v36 = vld [vmem:[%s415_s2 + $0x48] sm:$0xff] }
   0x9   :  { %218 = vmatpush.msra.mxu3 %v29_v2  ;;  %v156_v29 = vld [vmem:[%s415_s2 + $0x60] sm:$0xff]  ;;  %v146_v39 = vld [vmem:[%s415_s2 + $0x10] sm:$0xff]  ;;  %v157_v41 = vld [vmem:[%s415_s2 + $0x68] sm:$0xff] }
   0xa   :  { %207 = vmatmul.msk.f32.vlgmr.msra.gmra.mxu3 %vm32_vm1, %v26_v6  ;;  %v150_v40 = vld [vmem:[%s415_s2 + $0x30] sm:$0xff]  ;;  %v147_v51 = vld [vmem:[%s415_s2 + $0x18] sm:$0xff] }
   0xb   :  { %v154_v48 = vld [vmem:[%s415_s2 + $0x50] sm:$0xff]  ;;  %v151_v52 = vld [vmem:[%s415_s2 + $0x38] sm:$0xff] }
   0xc   :  { %v158_v53 = vld [vmem:[%s415_s2 + $0x70] sm:$0xff]  ;;  %v155_v60 = vld [vmem:[%s415_s2 + $0x58] sm:$0xff] }
   0xf   :  { %204 = vmatmul.msk.f32.gmra.mxu2 %vm32_vm1, %v23_v7 }
  0x10   :  { %196 = vmatmul.msk.f32.gmra.mxu0 %vm32_vm1, %v15_v8  ;;  %200 = vmatmul.msk.f32.gmra.mxu1 %vm32_vm1, %v19_v9 }
  0x12   :  { %208 = vmatmul.msk.f32.gmra.mxu3 %vm32_vm1, %v27_v10 }
  0x17   :  { %205 = vmatmul.msk.f32.gmra.mxu2 %vm32_vm1, %v24_v11 }
  0x18   :  { %197 = vmatmul.msk.f32.gmra.mxu0 %vm32_vm1, %v16_v12  ;;  %201 = vmatmul.msk.f32.gmra.mxu1 %vm32_vm1, %v20_v13 }
  0x1a   :  { %209 = vmatmul.msk.f32.gmra.mxu3 %vm32_vm1, %v28_v14 }
  0x1f   :  { %206 = vmatmul.msk.f32.gmra.mxu2 %vm32_vm1, %v25_v15 }
  0x20   :  { %198 = vmatmul.msk.f32.gmra.mxu0 %vm32_vm1, %v17_v16  ;;  %202 = vmatmul.msk.f32.gmra.mxu1 %vm32_vm1, %v21_v17 }
  0x85   :  { %v99_v20 = vpop.f32.mrf.mxu0  ;;  %v111_v21 = vpop.f32.mrf.mxu1 }
  0x86   :  { %v159_v22 = vadd.f32 %v144_v18, %v99_v20  ;;  %v163_v23 = vadd.f32 %v148_v19, %v111_v21 }
  0x88   :  { %175 = vst.msk [vmem:[%s416_s3] sm:$0xff] %vm174_vm2, %v159_v22 }
  0x89   :  { %179 = vst.msk [vmem:[%s416_s3 + $0x20] sm:$0xff] %vm174_vm2, %v163_v23 }
  0x8a   :  { %v123_v25 = vpop.f32.mrf.mxu2 }
  0x8b   :  { %v167_v26 = vadd.f32 %v152_v24, %v123_v25 }
  0x8d   :  { %183 = vst.msk [vmem:[%s416_s3 + $0x40] sm:$0xff] %vm174_vm2, %v167_v26  ;;  %v102_v30 = vpop.f32.mrf.mxu0  ;;  %v114_v31 = vpop.f32.mrf.mxu1 }
  0x8e   :  { %v160_v32 = vadd.f32 %v145_v27, %v102_v30  ;;  %v164_v33 = vadd.f32 %v149_v28, %v114_v31  ;;  %v135_v34 = vpop.f32.mrf.mxu3 }
  0x8f   :  { %v171_v35 = vadd.f32 %v156_v29, %v135_v34 }
  0x90   :  { %176 = vst.msk [vmem:[%s416_s3 + $0x8] sm:$0xff] %vm174_vm2, %v160_v32 }
  0x91   :  { %180 = vst.msk [vmem:[%s416_s3 + $0x28] sm:$0xff] %vm174_vm2, %v164_v33 }
  0x92   :  { %v126_v37 = vpop.f32.mrf.mxu2  ;;  %187 = vst.msk [vmem:[%s416_s3 + $0x60] sm:$0xff] %vm174_vm2, %v171_v35 }
  0x93   :  { %v168_v38 = vadd.f32 %v153_v36, %v126_v37 }
  0x95   :  { %184 = vst.msk [vmem:[%s416_s3 + $0x48] sm:$0xff] %vm174_vm2, %v168_v38  ;;  %v105_v42 = vpop.f32.mrf.mxu0  ;;  %v117_v43 = vpop.f32.mrf.mxu1 }
  0x96   :  { %v161_v44 = vadd.f32 %v146_v39, %v105_v42  ;;  %v165_v45 = vadd.f32 %v150_v40, %v117_v43  ;;  %v138_v46 = vpop.f32.mrf.mxu3 }
  0x97   :  { %v172_v47 = vadd.f32 %v157_v41, %v138_v46 }
  0x98   :  { %177 = vst.msk [vmem:[%s416_s3 + $0x10] sm:$0xff] %vm174_vm2, %v161_v44 }
  0x99   :  { %181 = vst.msk [vmem:[%s416_s3 + $0x30] sm:$0xff] %vm174_vm2, %v165_v45 }
  0x9a   :  { %v129_v49 = vpop.f32.mrf.mxu2  ;;  %188 = vst.msk [vmem:[%s416_s3 + $0x68] sm:$0xff] %vm174_vm2, %v172_v47 }
  0x9b   :  { %v169_v50 = vadd.f32 %v154_v48, %v129_v49 }
  0x9d   :  { %185 = vst.msk [vmem:[%s416_s3 + $0x50] sm:$0xff] %vm174_vm2, %v169_v50  ;;  %v108_v54 = vpop.f32.mrf.mxu0  ;;  %v120_v55 = vpop.f32.mrf.mxu1 }
  0x9e   :  { %v162_v56 = vadd.f32 %v147_v51, %v108_v54  ;;  %v166_v57 = vadd.f32 %v151_v52, %v120_v55  ;;  %v141_v58 = vpop.f32.mrf.mxu3 }
  0x9f   :  { %v173_v59 = vadd.f32 %v158_v53, %v141_v58 }
  0xa0   :  { %178 = vst.msk [vmem:[%s416_s3 + $0x18] sm:$0xff] %vm174_vm2, %v162_v56 }
  0xa1   :  { %182 = vst.msk [vmem:[%s416_s3 + $0x38] sm:$0xff] %vm174_vm2, %v166_v57 }
  0xa2   :  { %v132_v61 = vpop.f32.mrf.mxu2  ;;  %189 = vst.msk [vmem:[%s416_s3 + $0x70] sm:$0xff] %vm174_vm2, %v173_v59 }
  0xa3   :  { %v170_v62 = vadd.f32 %v155_v60, %v132_v61 }
  0xa5   :  { %186 = vst.msk [vmem:[%s416_s3 + $0x58] sm:$0xff] %vm174_vm2, %v170_v62 }

</bundles_post_ra>
